<compile_context>
chip_gen: v5e
topology: v5e:2x2
jax: 0.10.0
libtpu: 0.0.40
codegen_flags: <defaults>
</compile_context>

<pallas_src>
import jax
import jax.numpy as jnp
from jax import lax
from jax.experimental import pallas as pl
from jax.experimental.pallas import tpu as pltpu


def _transpose_kernel(x_ref, o_ref):
    # x_ref: (Cb, T) slab of the (N, C, H*W) view of the NCHW input.
    # o_ref: (T, Cb) slab of the (N, H*W, C) view of the NHWC output.
    o_ref[...] = lax.transpose(x_ref[...], (1, 0))
    # TODO(synk): if profiling shows exposed input DMA at large T, add
    # pipeline_mode=pl.Buffered(3) to the input BlockSpec instead of shrinking T.


def _round_up(x, m):
    return -(-x // m) * m


def _pick_tiles(n, c, hw, itemsize):
    """Return (T, Cb, num_c): spatial / channel tiles, VMEM- and grid-aware."""
    LANE = 128
    MIN_STEPS = 4                      # >= 2 per TensorCore on v7x, keeps pipeline busy
    sublane = max(8, 32 // itemsize)   # 8 (f32) / 16 (bf16) / 32 (int8, fp8)

    # Channel tile: only split very large C (bounds v5e scoped VMEM / vreg pressure).
    cb = c if c <= 1024 else 1024      # 1024 is lane-aligned (multiple of 128)
    num_c = -(-c // cb)

    # Spatial tile: real per-step VMEM = padded input tile + lane-padded output
    # tile; the BlockSpec pipeline double-buffers each of them.
    per_t_bytes = (_round_up(cb, sublane) + _round_up(cb, LANE)) * itemsize
    budget = 12 * 1024 * 1024          # per step; x2 buffers ~24 MiB < 32 MiB scope
    t = max(LANE, budget // per_t_bytes // LANE * LANE)
    if hw <= t:
        t = hw                         # full extent is always a legal block dim

    if hw > LANE:
        # Guarantee enough grid steps for DMA/compute overlap and both v7x cores.
        num_hw = -(-hw // t)
        while n * num_hw * num_c < MIN_STEPS and t > LANE:
            t = max(LANE, (t // 2) // LANE * LANE)
            num_hw = -(-hw // t)
        # Prefer a lane-aligned T that divides HW: no masked trailing tile.
        if t % LANE == 0 and hw % t != 0:
            for cand in range(t, t // 2, -LANE):
                if hw % cand == 0:
                    t = cand
                    break
    return t, cb, num_c


@jax.jit
def to_channels_last(x):
    """Pallas implementation of x.permute(0, 2, 3, 1) for an NCHW input."""
    n, c, h, w = x.shape
    hw = h * w
    if c == 1 or hw == 1:              # pure reshape: data order already matches
        return x.reshape(n, h, w, c)

    t, cb, num_c = _pick_tiles(n, c, hw, x.dtype.itemsize)
    grid = (n, -(-hw // t), num_c)

    x2 = x.reshape(n, c, hw)           # free view: NCHW is contiguous over H*W

    out = pl.pallas_call(
        _transpose_kernel,
        out_shape=jax.ShapeDtypeStruct((n, hw, c), x.dtype),
        grid_spec=pl.GridSpec(
            grid=grid,
            in_specs=[pl.BlockSpec((None, cb, t), lambda ni, ti, ci: (ni, ci, ti))],
            out_specs=pl.BlockSpec((None, t, cb), lambda ni, ti, ci: (ni, ti, ci)),
        ),
        compiler_params=pltpu.CompilerParams(
            dimension_semantics=("parallel", "parallel", "parallel"),
            vmem_limit_bytes=32 * 1024 * 1024,
        ),
        cost_estimate=pl.CostEstimate(
            flops=0,
            transcendentals=0,
            bytes_accessed=2 * x.size * x.dtype.itemsize,
        ),
    )(x2)

    return out.reshape(n, h, w, c)     # free view: NHWC is contiguous over (H*W, C)


if __name__ == "__main__":
    key = jax.random.PRNGKey(0)

    # Primary case: small conv-style NCHW input (the module's expected use).
    x = jax.random.normal(key, (2, 4, 16, 16), dtype=jnp.float32)
    out = to_channels_last(x)
    jax.block_until_ready(out)
    ref = jnp.transpose(x, (0, 2, 3, 1))
    assert out.shape == (2, 16, 16, 4)
    assert out.dtype == x.dtype
    assert jnp.array_equal(out, ref)

    # Extra coverage: HW % T != 0, C not a multiple of 8, bf16, and C >= 128.
    extra_cases = [
        ((2, 3, 16, 16), jnp.float32),    # C=3 (not a multiple of 8), HW tiled
        ((1, 16, 20, 10), jnp.bfloat16),  # bf16, HW=200 -> masked trailing tile
        ((1, 256, 8, 8), jnp.float32),    # C >= 128: already lane-dense output
    ]
    for shape, dtype in extra_cases:
        key, sub = jax.random.split(key)
        xi = jax.random.normal(sub, shape, dtype=dtype)
        oi = jax.block_until_ready(to_channels_last(xi))
        assert oi.dtype == xi.dtype
        assert jnp.array_equal(oi, jnp.transpose(xi, (0, 2, 3, 1)))

    print("KERNEL_OK")
</pallas_src>

<mosaic_0001>
module attributes {stable_mosaic.version = 11 : i64} {
  func.func @_transpose_kernel(%arg0: i32, %arg1: i32, %arg2: i32, %arg3: memref<1x4x128xf32, #tpu.memory_space<vmem>>, %arg4: memref<1x128x4xf32, #tpu.memory_space<vmem>>) attributes {dimension_semantics = [#tpu.dimension_semantics<parallel>, #tpu.dimension_semantics<parallel>, #tpu.dimension_semantics<parallel>], iteration_bounds = array<i64: 2, 2, 1>, scalar_prefetch = 0 : i64, scratch_operands = 0 : i64, tpu.core_type = #tpu.core_type<tc>, window_params = [{transform_indices = @transform_0, window_bounds = array<i64: 1, 4, 128>}, {transform_indices = @transform_1, window_bounds = array<i64: 1, 128, 4>}]} {
    %c0 = arith.constant 0 : index
    %c0_0 = arith.constant 0 : index
    %c0_1 = arith.constant 0 : index
    %0 = vector.load %arg3[%c0, %c0_0, %c0_1] : memref<1x4x128xf32, #tpu.memory_space<vmem>>, vector<1x4x128xf32>
    %1 = vector.shape_cast %0 : vector<1x4x128xf32> to vector<4x128xf32>
    %2 = tpu.transpose %1, [1, 0] : vector<4x128xf32> -> vector<128x4xf32>
    %c0_2 = arith.constant 0 : index
    %c0_3 = arith.constant 0 : index
    %c0_4 = arith.constant 0 : index
    %3 = vector.load %arg4[%c0_2, %c0_3, %c0_4] : memref<1x128x4xf32, #tpu.memory_space<vmem>>, vector<1x128x4xf32>
    %4 = vector.shape_cast %3 : vector<1x128x4xf32> to vector<128x4xf32>
    %5 = vector.shape_cast %2 : vector<128x4xf32> to vector<1x128x4xf32>
    tpu.vector_store %arg4[%c0_2, %c0_3, %c0_4], %5 {strides = array<i32>} : memref<1x128x4xf32, #tpu.memory_space<vmem>>, vector<1x128x4xf32>,
    return
  }
  func.func @transform_0(%arg0: i32, %arg1: i32, %arg2: i32) -> (i32, i32, i32) {
    %c0_i32 = arith.constant 0 : i32
    return %arg0, %arg2, %arg1 : i32, i32, i32
  }
  func.func @transform_1(%arg0: i32, %arg1: i32, %arg2: i32) -> (i32, i32, i32) {
    %c0_i32 = arith.constant 0 : i32
    return %arg0, %arg1, %arg2 : i32, i32, i32
  }
}

</mosaic_0001>

<bundles_post_ra>
// kernel: to_channels_last.1
= control target key start
LH: loop header
LB: loop body
LE: loop exit
PB: predicated region body
PF: predicated region fallthrough
CT: control target
= control target key end

     0   :  { %s442_s6 = smov 0   ;;  %s444_s7 = smov 0   ;;  %s527_s0 = inlined_call_operand.vmem [shape: f32[2,4,256], index: 0, kind: input, shape index: {}]   ;;  %s528_s1 = inlined_call_operand.vmem [shape: f32[2,256,4], index: 1, kind: output, shape index: {}]  }
   0x1   :  { %s446_s8 = smov 0   ;;  %s448_s9 = smov 0  }
   0x2   :  { %s450_s10 = smov 0  }
   0x3 LB: > { %s26_s11 = sadd.s32 1, %s422_s8  ;;  %s30_s12 = sadd.s32 1, %s426_s9  ;;  %s430_s10 = sphi %s450_s10, %s11_s10   ;;  %s426_s9 = sphi %s448_s9, %s532_s9   ;;  %s422_s8 = sphi %s446_s8, %s531_s8   ;;  %s418_s7 = sphi %s444_s7, %s530_s7   ;;  %s414_s6 = sphi %s442_s6, %s529_s6  }
   0x4   : > { %p28_p0 = scmp.ge.s32.totalorder %s26_s11, 2  ;;  %p343_p1 = scmp.ge.s32.totalorder %s430_s10, 1 }
   0x5   : > { %p121_p2 = scmp.lt.s32.totalorder %s430_s10, 5 }
   0x6   : > { %s534_s11 = smov (%p28_p0, %s26_s11), 0  ;;  %s536_s12 = smov (!%p28_p0, %s30_s12), %s426_s9 }
   0x7   : > { %p122_p3 = pnand %p343_p1, %p121_p2  ;;  %p32_p4 = scmp.ge.s32.totalorder %s536_s12, 2 }
   0x8   : > { %p155_p5 = scmp.lt.s32.totalorder (!%p122_p3), %s418_s7, 1  ;;  %p159_p6 = scmp.lt.s32.totalorder (!%p122_p3), %s414_s6, 1 }
   0x9   : > { %s538_s12 = smov (%p32_p4, %s536_s12), 0  ;;  %125 = sbr.rel (%p122_p3) target bundleno = 307 (0x133), region = 24 }
   0xa   : > { %s346_s20 = sshll.u32 (!%p122_p3), %s414_s6, 4 }
   0xb   : > { %p170_p7 = scmp.lt.s32.totalorder (!%p122_p3), %s346_s20, 31 }
   0xe   : > { %s540_s7 = smov (!%p155_p5, %s418_s7), 1  ;;  %s542_s20 = smov (!%p170_p7, %s346_s20), 31  ;;  %vm213_vm0 = vcmask 31744  }
   0xf   : > { %s160_s13 = scalar_select %p159_p6, %s414_s6, 1 }
  0x10   : > { %s344_s14 = sshll.u32 %s540_s7, 1  ;;  %s347_s21 = sshll.u32 %s540_s7, 5 }
  0x11   : > { %s164_s15 = sadd.s32 %s344_s14, %s160_s13  ;;  %s176_s22 = sadd.s32 %s347_s21, %s542_s20 }
  0x12   : > { %s345_s16 = sshll.u32 %s164_s15, 2  ;;  %s348_s23 = sshll.u32 %s176_s22, 3 }
  0x13   : > { %s166_s19 = scalar_lea.vmem %s527_s0, %s345_s16  ;;  %s478_s26 = scalar_lea.vmem %s528_s1, %s348_s23 }
  0x14   : > { %v180_v0 = vld [vmem:[%s166_s19] sm:$0xf] }
  0x15   : > { %181 = vxpose.xlu0.b32.start.end [1/1] (short) %v180_v0, 128 }
  0xb9   : > { %v197_v1 = vpop.trf.xlu0 }
  0xba   : > { %214 = vst.msk [vmem:[%s478_s26] sm:$0xff] %vm213_vm0, %v197_v1 }
  0xc1   : > { %v198_v2 = vpop.trf.xlu0 }
  0xc2   : > { %215 = vst.msk [vmem:[%s478_s26 + $0x8] sm:$0xff] %vm213_vm0, %v198_v2 }
  0xc9   : > { %v199_v3 = vpop.trf.xlu0 }
  0xca   : > { %216 = vst.msk [vmem:[%s478_s26 + $0x10] sm:$0xff] %vm213_vm0, %v199_v3 }
  0xd1   : > { %v200_v4 = vpop.trf.xlu0 }
  0xd2   : > { %217 = vst.msk [vmem:[%s478_s26 + $0x18] sm:$0xff] %vm213_vm0, %v200_v4 }
  0xd9   : > { %v201_v5 = vpop.trf.xlu0 }
  0xda   : > { %218 = vst.msk [vmem:[%s478_s26 + $0x20] sm:$0xff] %vm213_vm0, %v201_v5 }
  0xe1   : > { %v202_v6 = vpop.trf.xlu0 }
  0xe2   : > { %219 = vst.msk [vmem:[%s478_s26 + $0x28] sm:$0xff] %vm213_vm0, %v202_v6 }
  0xe9   : > { %v203_v7 = vpop.trf.xlu0 }
  0xea   : > { %220 = vst.msk [vmem:[%s478_s26 + $0x30] sm:$0xff] %vm213_vm0, %v203_v7 }
  0xf1   : > { %v204_v8 = vpop.trf.xlu0 }
  0xf2   : > { %221 = vst.msk [vmem:[%s478_s26 + $0x38] sm:$0xff] %vm213_vm0, %v204_v8 }
  0xf9   : > { %v205_v9 = vpop.trf.xlu0 }
  0xfa   : > { %222 = vst.msk [vmem:[%s478_s26 + $0x40] sm:$0xff] %vm213_vm0, %v205_v9 }
 0x101   : > { %v206_v10 = vpop.trf.xlu0 }
 0x102   : > { %223 = vst.msk [vmem:[%s478_s26 + $0x48] sm:$0xff] %vm213_vm0, %v206_v10 }
 0x109   : > { %v207_v11 = vpop.trf.xlu0 }
 0x10a   : > { %224 = vst.msk [vmem:[%s478_s26 + $0x50] sm:$0xff] %vm213_vm0, %v207_v11 }
 0x111   : > { %v208_v12 = vpop.trf.xlu0 }
 0x112   : > { %225 = vst.msk [vmem:[%s478_s26 + $0x58] sm:$0xff] %vm213_vm0, %v208_v12 }
 0x119   : > { %v209_v13 = vpop.trf.xlu0 }
 0x11a   : > { %226 = vst.msk [vmem:[%s478_s26 + $0x60] sm:$0xff] %vm213_vm0, %v209_v13 }
 0x121   : > { %v210_v14 = vpop.trf.xlu0 }
 0x122   : > { %227 = vst.msk [vmem:[%s478_s26 + $0x68] sm:$0xff] %vm213_vm0, %v210_v14 }
 0x129   : > { %v211_v15 = vpop.trf.xlu0 }
 0x12a   : > { %228 = vst.msk [vmem:[%s478_s26 + $0x70] sm:$0xff] %vm213_vm0, %v211_v15 }
 0x131   : > { %v212_v16 = vpop.trf.xlu0 }
 0x132   : > { %229 = vst.msk [vmem:[%s478_s26 + $0x78] sm:$0xff] %vm213_vm0, %v212_v16 }
 0x133 PF: > { %s11_s10 = sadd.s32 1, %s430_s10   ;;  %s529_s6 = smov %s422_s8 }
 0x134   : > { %p8_p8 = scmp.ge.s32.totalorder %s11_s10, 6   ;;  %s530_s7 = smov %s426_s9 }
 0x135   : > { %s531_s8 = smov %s534_s11  ;;  %s532_s9 = smov %s538_s12 }
 0x136   :  { %10 = sbr.rel (!%p8_p8) target bundleno = 3 (0x3), region = 54 }

</bundles_post_ra>
